<compile_context>
chip_gen: v5e
topology: v5e:2x2
jax: 0.10.0
libtpu: 0.0.40
codegen_flags: <defaults>
</compile_context>

<pallas_src>
import jax
import jax.numpy as jnp
from jax.experimental import pallas as pl
from jax.experimental.pallas import tpu as pltpu

HIDDEN = 512


def criticq_kernel(state_ref, action_ref, w1s_ref, w1a_ref, b1_ref,
                   w2_ref, b2_ref, w3_ref, b3_ref, o_ref):
    # Small activations -> bf16 (cheap), big weights stay bf16 from HBM.
    # All MXU accumulation is f32 (preferred_element_type); biases/ReLU in f32.
    s = state_ref[...].astype(jnp.bfloat16)      # (tb, state_dim)
    a = action_ref[...].astype(jnp.bfloat16)     # (tb, action_dim)

    # ---- hidden1: concat fused as two bf16 matmuls against the split w1 ----
    h1 = (jnp.dot(s, w1s_ref[...], preferred_element_type=jnp.float32)
          + jnp.dot(a, w1a_ref[...], preferred_element_type=jnp.float32)
          + b1_ref[...])
    h1 = jnp.maximum(h1, 0.0)

    # ---- hidden2 -----------------------------------------------------------
    h2 = (jnp.dot(h1.astype(jnp.bfloat16), w2_ref[...],
                  preferred_element_type=jnp.float32)
          + b2_ref[...])
    h2 = jnp.maximum(h2, 0.0)

    # ---- out: lane-dense (1, H) weight row, VPU mul + cross-lane reduce ----
    w3 = w3_ref[...].astype(jnp.float32)          # (1, H): ~2 KiB, negligible
    q = jnp.sum(h2 * w3, axis=-1, keepdims=True) + b3_ref[0, 0]
    o_ref[...] = q                                # (tb, 1)


def _pick_batch_tile(B):
    """Largest-first batch tile, multiple of 8, capped at 512 rows.

    The cap keeps h1/h2 intermediates (tb x 512 f32) and double-buffered I/O
    well inside VMEM on every generation (incl. v7x's 64 MiB); awkward batch
    sizes are handled by padding B up to a tile multiple in the wrapper
    instead of degenerating into many tiny grid steps.
    """
    b8 = ((B + 7) // 8) * 8
    return min(512, b8)


def stacked_criticq_forward(state, action, params):
    """Fused forward of C stacked critics (e.g. SAC twin Q1/Q2).

    state: (B, state_dim) f32, action: (B, action_dim) f32.
    params: tuple of arrays each with a leading critic axis C.
    Returns (C, B, 1) f32.
    """
    w1_s, w1_a, b1, w2, b2, w3, b3 = params
    state = state.astype(jnp.float32)
    action = action.astype(jnp.float32)

    C = w2.shape[0]
    B, state_dim = state.shape
    action_dim = action.shape[1]
    hidden = w2.shape[-1]
    in_dim = state_dim + action_dim

    tb = _pick_batch_tile(B)
    nb = pl.cdiv(B, tb)
    B_pad = nb * tb
    if B_pad != B:
        state = jnp.pad(state, ((0, B_pad - B), (0, 0)))
        action = jnp.pad(action, ((0, B_pad - B), (0, 0)))

    # Critic axis OUTERMOST so each critic's weights stay VMEM-resident across
    # its batch sweep; both axes "parallel" so v7x can put Q2 on the 2nd core.
    grid = (C, nb)

    vmem = pltpu.MemorySpace.VMEM
    smem = pltpu.MemorySpace.SMEM
    in_specs = [
        pl.BlockSpec((tb, state_dim), lambda c, i: (i, 0), memory_space=vmem),
        pl.BlockSpec((tb, action_dim), lambda c, i: (i, 0), memory_space=vmem),
        pl.BlockSpec((None, state_dim, hidden), lambda c, i: (c, 0, 0),
                     memory_space=vmem),
        pl.BlockSpec((None, action_dim, hidden), lambda c, i: (c, 0, 0),
                     memory_space=vmem),
        pl.BlockSpec((None, 1, hidden), lambda c, i: (c, 0, 0),
                     memory_space=vmem),
        pl.BlockSpec((None, hidden, hidden), lambda c, i: (c, 0, 0),
                     memory_space=vmem),
        pl.BlockSpec((None, 1, hidden), lambda c, i: (c, 0, 0),
                     memory_space=vmem),
        pl.BlockSpec((None, 1, hidden), lambda c, i: (c, 0, 0),
                     memory_space=vmem),
        pl.BlockSpec((1, 1), lambda c, i: (c, 0), memory_space=smem),
    ]
    out_spec = pl.BlockSpec((None, tb, 1), lambda c, i: (c, i, 0),
                            memory_space=vmem)

    flops = 2 * C * B_pad * (in_dim * hidden + hidden * hidden + hidden)
    bytes_accessed = (
        B_pad * (state_dim + action_dim) * 4            # activations in (f32)
        + C * B_pad * 4                                 # q out (f32)
        + C * (in_dim * hidden + hidden * hidden + hidden) * 2  # bf16 weights
        + C * (2 * hidden + 1) * 4)                     # f32 biases

    out = pl.pallas_call(
        criticq_kernel,
        out_shape=jax.ShapeDtypeStruct((C, B_pad, 1), jnp.float32),
        grid=grid,
        in_specs=in_specs,
        out_specs=out_spec,
        compiler_params=pltpu.CompilerParams(
            dimension_semantics=("parallel", "parallel")),
        cost_estimate=pl.CostEstimate(
            flops=flops, transcendentals=0, bytes_accessed=bytes_accessed),
    )(state, action, w1_s, w1_a, b1, w2, b2, w3, b3)

    return out[:, :B, :]


def criticq_forward(state, action, params):
    """Module-equivalent single-critic forward: (B, sd), (B, ad) -> (B, 1)."""
    return stacked_criticq_forward(state, action, params)[0]


def init_params(key, state_dim, action_dim, hidden=HIDDEN):
    """Synthetic init mirroring the PyTorch module, for ONE critic (C=1 axis).

    hidden1/hidden2: PyTorch default Linear init (uniform +-1/sqrt(fan_in));
    out: init_layer_uniform with init_w=0.003. Weights stored transposed,
    (in_features, out_features), in bfloat16; w1 split into state/action row
    blocks; w3 is a lane-dense (1, hidden) row; biases are f32.
    """
    in_dim = state_dim + action_dim
    k = jax.random.split(key, 6)

    def linear_init(kw, kb, fan_in, fan_out):
        bound = 1.0 / float(fan_in) ** 0.5
        w = jax.random.uniform(kw, (fan_in, fan_out), jnp.float32, -bound, bound)
        b = jax.random.uniform(kb, (1, fan_out), jnp.float32, -bound, bound)
        return w, b

    w1, b1 = linear_init(k[0], k[1], in_dim, hidden)
    w2, b2 = linear_init(k[2], k[3], hidden, hidden)
    init_w = 0.003
    w3 = jax.random.uniform(k[4], (1, hidden), jnp.float32, -init_w, init_w)
    b3 = jax.random.uniform(k[5], (1, 1), jnp.float32, -init_w, init_w)

    return (w1[:state_dim].astype(jnp.bfloat16)[None],   # (1, sd, H)
            w1[state_dim:].astype(jnp.bfloat16)[None],   # (1, ad, H)
            b1[None],                                     # (1, 1, H)
            w2.astype(jnp.bfloat16)[None],                # (1, H, H)
            b2[None],                                     # (1, 1, H)
            w3.astype(jnp.bfloat16)[None],                # (1, 1, H)
            b3)                                           # (1, 1)


def stack_params(param_list):
    """Stack per-critic params (each with leading C=1) along the critic axis."""
    return tuple(jnp.concatenate(ps, axis=0) for ps in zip(*param_list))


def criticq_reference(state, action, params, critic=0):
    """Pure-JAX reference mirroring the kernel's precision:
    bf16 weights + bf16 activations into the matmuls, f32 accumulation."""
    w1_s, w1_a, b1, w2, b2, w3, b3 = [p[critic] for p in params]
    x = jnp.concatenate([state, action], axis=-1).astype(jnp.bfloat16)
    w1 = jnp.concatenate([w1_s, w1_a], axis=0)            # bf16 (in_dim, H)
    h1 = jnp.maximum(
        jnp.dot(x, w1, preferred_element_type=jnp.float32) + b1, 0.0)
    h2 = jnp.maximum(
        jnp.dot(h1.astype(jnp.bfloat16), w2,
                preferred_element_type=jnp.float32) + b2, 0.0)
    return jnp.dot(h2, w3.astype(jnp.float32).T) + b3


if __name__ == "__main__":
    key = jax.random.PRNGKey(0)
    k_state, k_action, k_p1, k_p2 = jax.random.split(key, 4)

    B = 8
    state_dim = 24
    action_dim = 8

    state = jax.random.normal(k_state, (B, state_dim), jnp.float32)
    action = jax.random.normal(k_action, (B, action_dim), jnp.float32)

    # --- single critic (module-equivalent path) ---------------------------
    params1 = init_params(k_p1, state_dim, action_dim)
    q = criticq_forward(state, action, params1)
    jax.block_until_ready(q)
    q_ref = criticq_reference(state, action, params1, critic=0)
    assert q.shape == (B, 1)
    assert jnp.allclose(q, q_ref, atol=2e-3, rtol=2e-3), (
        f"single-critic max abs err {jnp.max(jnp.abs(q - q_ref))}")

    # --- fused SAC twin critics: one pallas_call for Q1 and Q2 ------------
    params2 = init_params(k_p2, state_dim, action_dim)
    twin = stack_params([params1, params2])
    q_twin = stacked_criticq_forward(state, action, twin)   # (2, B, 1)
    jax.block_until_ready(q_twin)
    q2_ref = criticq_reference(state, action, twin, critic=1)
    assert q_twin.shape == (2, B, 1)
    assert jnp.allclose(q_twin[0], q_ref, atol=2e-3, rtol=2e-3), (
        f"twin Q1 max abs err {jnp.max(jnp.abs(q_twin[0] - q_ref))}")
    assert jnp.allclose(q_twin[1], q2_ref, atol=2e-3, rtol=2e-3), (
        f"twin Q2 max abs err {jnp.max(jnp.abs(q_twin[1] - q2_ref))}")

    print("KERNEL_OK")
</pallas_src>

<mosaic_0001>
module attributes {stable_mosaic.version = 11 : i64} {
  func.func @criticq_kernel(%arg0: i32, %arg1: i32, %arg2: memref<8x24xf32, #tpu.memory_space<vmem>>, %arg3: memref<8x8xf32, #tpu.memory_space<vmem>>, %arg4: memref<1x24x512xbf16, #tpu.memory_space<vmem>>, %arg5: memref<1x8x512xbf16, #tpu.memory_space<vmem>>, %arg6: memref<1x1x512xf32, #tpu.memory_space<vmem>>, %arg7: memref<1x512x512xbf16, #tpu.memory_space<vmem>>, %arg8: memref<1x1x512xf32, #tpu.memory_space<vmem>>, %arg9: memref<1x1x512xbf16, #tpu.memory_space<vmem>>, %arg10: memref<1x1xf32, #tpu.memory_space<smem>>, %arg11: memref<1x8x1xf32, #tpu.memory_space<vmem>>) attributes {dimension_semantics = [#tpu.dimension_semantics<parallel>, #tpu.dimension_semantics<parallel>], iteration_bounds = array<i64: 1, 1>, scalar_prefetch = 0 : i64, scratch_operands = 0 : i64, tpu.core_type = #tpu.core_type<tc>, window_params = [{transform_indices = @transform_0, window_bounds = array<i64: 8, 24>}, {transform_indices = @transform_1, window_bounds = array<i64: 8, 8>}, {transform_indices = @transform_2, window_bounds = array<i64: 1, 24, 512>}, {transform_indices = @transform_3, window_bounds = array<i64: 1, 8, 512>}, {transform_indices = @transform_4, window_bounds = array<i64: 1, 1, 512>}, {transform_indices = @transform_5, window_bounds = array<i64: 1, 512, 512>}, {transform_indices = @transform_6, window_bounds = array<i64: 1, 1, 512>}, {transform_indices = @transform_7, window_bounds = array<i64: 1, 1, 512>}, {transform_indices = @transform_8, window_bounds = array<i64: 1, 1>}, {transform_indices = @transform_9, window_bounds = array<i64: 1, 8, 1>}]} {
    %c0 = arith.constant 0 : index
    %c0_0 = arith.constant 0 : index
    %0 = vector.load %arg2[%c0, %c0_0] : memref<8x24xf32, #tpu.memory_space<vmem>>, vector<8x24xf32>
    %1 = arith.truncf %0 : vector<8x24xf32> to vector<8x24xbf16>
    %c0_1 = arith.constant 0 : index
    %c0_2 = arith.constant 0 : index
    %2 = vector.load %arg3[%c0_1, %c0_2] : memref<8x8xf32, #tpu.memory_space<vmem>>, vector<8x8xf32>
    %3 = arith.truncf %2 : vector<8x8xf32> to vector<8x8xbf16>
    %c0_3 = arith.constant 0 : index
    %c0_4 = arith.constant 0 : index
    %c0_5 = arith.constant 0 : index
    %4 = vector.load %arg4[%c0_3, %c0_4, %c0_5] : memref<1x24x512xbf16, #tpu.memory_space<vmem>>, vector<1x24x512xbf16>
    %5 = vector.shape_cast %4 : vector<1x24x512xbf16> to vector<24x512xbf16>
    %cst = arith.constant dense<0.000000e+00> : vector<8x512xf32>
    %6 = tpu.matmul %1, %5, %cst {dimension_numbers = #tpu.dot_dimension_numbers<[1], [0], [0], [1], [0, 0, 1, 1], [], []>} : vector<8x24xbf16>, vector<24x512xbf16>, vector<8x512xf32> -> vector<8x512xf32>
    %c0_6 = arith.constant 0 : index
    %c0_7 = arith.constant 0 : index
    %c0_8 = arith.constant 0 : index
    %7 = vector.load %arg5[%c0_6, %c0_7, %c0_8] : memref<1x8x512xbf16, #tpu.memory_space<vmem>>, vector<1x8x512xbf16>
    %8 = vector.shape_cast %7 : vector<1x8x512xbf16> to vector<8x512xbf16>
    %cst_9 = arith.constant dense<0.000000e+00> : vector<8x512xf32>
    %9 = tpu.matmul %3, %8, %cst_9 {dimension_numbers = #tpu.dot_dimension_numbers<[1], [0], [0], [1], [0, 0, 1, 1], [], []>} : vector<8x8xbf16>, vector<8x512xbf16>, vector<8x512xf32> -> vector<8x512xf32>
    %10 = arith.addf %6, %9 : vector<8x512xf32>
    %c0_10 = arith.constant 0 : index
    %c0_11 = arith.constant 0 : index
    %c0_12 = arith.constant 0 : index
    %11 = vector.load %arg6[%c0_10, %c0_11, %c0_12] : memref<1x1x512xf32, #tpu.memory_space<vmem>>, vector<1x1x512xf32>
    %12 = vector.shape_cast %11 : vector<1x1x512xf32> to vector<1x512xf32>
    %13 = vector.broadcast %12 : vector<1x512xf32> to vector<8x512xf32>
    %14 = arith.addf %10, %13 : vector<8x512xf32>
    %cst_13 = arith.constant 0.000000e+00 : f32
    %15 = vector.broadcast %cst_13 : f32 to vector<8x512xf32>
    %16 = arith.maximumf %14, %15 : vector<8x512xf32>
    %17 = arith.truncf %16 : vector<8x512xf32> to vector<8x512xbf16>
    %c0_14 = arith.constant 0 : index
    %c0_15 = arith.constant 0 : index
    %c0_16 = arith.constant 0 : index
    %18 = vector.load %arg7[%c0_14, %c0_15, %c0_16] : memref<1x512x512xbf16, #tpu.memory_space<vmem>>, vector<1x512x512xbf16>
    %19 = vector.shape_cast %18 : vector<1x512x512xbf16> to vector<512x512xbf16>
    %cst_17 = arith.constant dense<0.000000e+00> : vector<8x512xf32>
    %20 = tpu.matmul %17, %19, %cst_17 {dimension_numbers = #tpu.dot_dimension_numbers<[1], [0], [0], [1], [0, 0, 1, 1], [], []>} : vector<8x512xbf16>, vector<512x512xbf16>, vector<8x512xf32> -> vector<8x512xf32>
    %c0_18 = arith.constant 0 : index
    %c0_19 = arith.constant 0 : index
    %c0_20 = arith.constant 0 : index
    %21 = vector.load %arg8[%c0_18, %c0_19, %c0_20] : memref<1x1x512xf32, #tpu.memory_space<vmem>>, vector<1x1x512xf32>
    %22 = vector.shape_cast %21 : vector<1x1x512xf32> to vector<1x512xf32>
    %23 = vector.broadcast %22 : vector<1x512xf32> to vector<8x512xf32>
    %24 = arith.addf %20, %23 : vector<8x512xf32>
    %cst_21 = arith.constant 0.000000e+00 : f32
    %25 = vector.broadcast %cst_21 : f32 to vector<8x512xf32>
    %26 = arith.maximumf %24, %25 : vector<8x512xf32>
    %c0_22 = arith.constant 0 : index
    %c0_23 = arith.constant 0 : index
    %c0_24 = arith.constant 0 : index
    %27 = vector.load %arg9[%c0_22, %c0_23, %c0_24] : memref<1x1x512xbf16, #tpu.memory_space<vmem>>, vector<1x1x512xbf16>
    %28 = vector.shape_cast %27 : vector<1x1x512xbf16> to vector<1x512xbf16>
    %29 = arith.extf %28 : vector<1x512xbf16> to vector<1x512xf32>
    %30 = vector.broadcast %29 : vector<1x512xf32> to vector<8x512xf32>
    %31 = arith.mulf %26, %30 : vector<8x512xf32>
    %cst_25 = arith.constant dense<0.000000e+00> : vector<8xf32>
    %32 = vector.multi_reduction <add>, %31, %cst_25 [1] : vector<8x512xf32> to vector<8xf32>
    %33 = vector.shape_cast %32 : vector<8xf32> to vector<8x1xf32>
    %c0_26 = arith.constant 0 : index
    %c0_27 = arith.constant 0 : index
    %34 = memref.load %arg10[%c0_26, %c0_27] : memref<1x1xf32, #tpu.memory_space<smem>>
    %35 = vector.broadcast %34 : f32 to vector<8x1xf32>
    %36 = arith.addf %33, %35 : vector<8x1xf32>
    %c0_28 = arith.constant 0 : index
    %c0_29 = arith.constant 0 : index
    %c0_30 = arith.constant 0 : index
    %37 = vector.load %arg11[%c0_28, %c0_29, %c0_30] : memref<1x8x1xf32, #tpu.memory_space<vmem>>, vector<1x8x1xf32>
    %38 = vector.shape_cast %37 : vector<1x8x1xf32> to vector<8x1xf32>
    %39 = vector.shape_cast %36 : vector<8x1xf32> to vector<1x8x1xf32>
    tpu.vector_store %arg11[%c0_28, %c0_29, %c0_30], %39 {strides = array<i32>} : memref<1x8x1xf32, #tpu.memory_space<vmem>>, vector<1x8x1xf32>,
    return
  }
  func.func @transform_0(%arg0: i32, %arg1: i32) -> (i32, i32) {
    %c0_i32 = arith.constant 0 : i32
    %c0_i32_0 = arith.constant 0 : i32
    return %arg1, %c0_i32 : i32, i32
  }
  func.func @transform_1(%arg0: i32, %arg1: i32) -> (i32, i32) {
    %c0_i32 = arith.constant 0 : i32
    %c0_i32_0 = arith.constant 0 : i32
    return %arg1, %c0_i32 : i32, i32
  }
  func.func @transform_2(%arg0: i32, %arg1: i32) -> (i32, i32, i32) {
    %c0_i32 = arith.constant 0 : i32
    %c0_i32_0 = arith.constant 0 : i32
    %c0_i32_1 = arith.constant 0 : i32
    return %arg0, %c0_i32, %c0_i32_0 : i32, i32, i32
  }
  func.func @transform_3(%arg0: i32, %arg1: i32) -> (i32, i32, i32) {
    %c0_i32 = arith.constant 0 : i32
    %c0_i32_0 = arith.constant 0 : i32
    %c0_i32_1 = arith.constant 0 : i32
    return %arg0, %c0_i32, %c0_i32_0 : i32, i32, i32
  }
  func.func @transform_4(%arg0: i32, %arg1: i32) -> (i32, i32, i32) {
    %c0_i32 = arith.constant 0 : i32
    %c0_i32_0 = arith.constant 0 : i32
    %c0_i32_1 = arith.constant 0 : i32
    return %arg0, %c0_i32, %c0_i32_0 : i32, i32, i32
  }
  func.func @transform_5(%arg0: i32, %arg1: i32) -> (i32, i32, i32) {
    %c0_i32 = arith.constant 0 : i32
    %c0_i32_0 = arith.constant 0 : i32
    %c0_i32_1 = arith.constant 0 : i32
    return %arg0, %c0_i32, %c0_i32_0 : i32, i32, i32
  }
  func.func @transform_6(%arg0: i32, %arg1: i32) -> (i32, i32, i32) {
    %c0_i32 = arith.constant 0 : i32
    %c0_i32_0 = arith.constant 0 : i32
    %c0_i32_1 = arith.constant 0 : i32
    return %arg0, %c0_i32, %c0_i32_0 : i32, i32, i32
  }
  func.func @transform_7(%arg0: i32, %arg1: i32) -> (i32, i32, i32) {
    %c0_i32 = arith.constant 0 : i32
    %c0_i32_0 = arith.constant 0 : i32
    %c0_i32_1 = arith.constant 0 : i32
    return %arg0, %c0_i32, %c0_i32_0 : i32, i32, i32
  }
  func.func @transform_8(%arg0: i32, %arg1: i32) -> (i32, i32) {
    %c0_i32 = arith.constant 0 : i32
    %c0_i32_0 = arith.constant 0 : i32
    return %arg0, %c0_i32 : i32, i32
  }
  func.func @transform_9(%arg0: i32, %arg1: i32) -> (i32, i32, i32) {
    %c0_i32 = arith.constant 0 : i32
    %c0_i32_0 = arith.constant 0 : i32
    return %arg0, %arg1, %c0_i32 : i32, i32, i32
  }
}

</mosaic_0001>

<bundles_post_ra>
// kernel: tpu_custom_call.1
= control target key start
LH: loop header
LB: loop body
LE: loop exit
PB: predicated region body
PF: predicated region fallthrough
CT: control target
= control target key end

     0   :  { %15 = vsyncpa [#allocation4], 0  ;;  %s2314_s0 = inlined_call_operand.hbm [shape: f32[8,24], index: 0, kind: input, shape index: {}]   ;;  %s2315_s1 = inlined_call_operand.hbm [shape: f32[8,8], index: 1, kind: input, shape index: {}]   ;;  %s2316_s2 = inlined_call_operand.hbm [shape: bf16[1,24,512], index: 2, kind: input, shape index: {}]   ;;  %s2317_s3 = inlined_call_operand.hbm [shape: bf16[1,8,512], index: 3, kind: input, shape index: {}]   ;;  %s2318_s4 = inlined_call_operand.vmem [shape: f32[1,1,512], index: 4, kind: input, shape index: {}]   ;;  %s2319_s5 = inlined_call_operand.hbm [shape: bf16[1,512,512], index: 5, kind: input, shape index: {}]   ;;  %s2320_s6 = inlined_call_operand.hbm [shape: f32[1,1,512], index: 6, kind: input, shape index: {}]   ;;  %s2321_s7 = inlined_call_operand.vmem [shape: bf16[1,1,512], index: 7, kind: input, shape index: {}]   ;;  %s2322_s8 = inlined_call_operand.<no memory space> [shape: f32[1,1], index: 8, kind: input, shape index: {}]   ;;  %s2323_s9 = inlined_call_operand.vmem [shape: f32[1,8,1], index: 9, kind: output, shape index: {}]  }
   0x1   :  { %16 = vsyncpa [#allocation6], 0 }
   0x2   :  { %17 = vsyncpa [#allocation9], 0  ;;  %s35_s11 = sshll.u32 %s2315_s1, 4  ;;  %s36_s11 = int_to_ptr.hbm [resolvable:$true] %s35_s11 }
   0x3   :  { %18 = vsyncpa [#allocation12], 0  ;;  %s2186_s12 = smov [#allocation5]   ;;  %s59_s16 = sshll.u32 %s2317_s3, 4  ;;  %s60_s16 = int_to_ptr.hbm [resolvable:$true] %s59_s16 }
   0x4   :  { %s37_s13 = sshll.u32 %s2186_s12, 4  ;;  %s2187_s17 = smov [#allocation8]   ;;  %s38_s13 = int_to_ptr.vmem [resolvable:$true] %s37_s13 }
   0x5   :  { %40 = dma.hbm_to_vmem [thread:$0]  %s36_s11, 128, %s38_s13, [#allocation6]  }
   0x6   :  { %s61_s18 = sshll.u32 %s2187_s17, 4  ;;  %s24_s21 = sshll.u32 %s2314_s0, 4  ;;  %s62_s18 = int_to_ptr.vmem [resolvable:$true] %s61_s18  ;;  %s25_s21 = int_to_ptr.hbm [resolvable:$true] %s24_s21 }
   0x7   :  { %64 = dma.hbm_to_vmem [thread:$0]  %s60_s16, 256, %s62_s18, [#allocation9]  }
   0x8   :  { %s45_s23 = sshll.u32 %s2316_s2, 4  ;;  %s2188_s24 = smov [#allocation3]   ;;  %s46_s23 = int_to_ptr.hbm [resolvable:$true] %s45_s23 }
   0x9   :  { %s26_s25 = sshll.u32 %s2188_s24, 4  ;;  %s2189_s3 = smov [#allocation7]   ;;  %s27_s25 = int_to_ptr.vmem [resolvable:$true] %s26_s25 }
   0xa   :  { %29 = dma.hbm_to_vmem [thread:$0]  %s25_s21, 128, %s27_s25, [#allocation4]  }
   0xb   :  { %s47_s26 = sshll.u32 %s2189_s3, 4  ;;  %s2190_s27 = smov 256   ;;  %s48_s26 = int_to_ptr.vmem [resolvable:$true] %s47_s26 }
   0xc   :  { %s2191_s28 = smov 16   ;;  %s71_s30 = sshll.u32 %s2319_s5, 4  ;;  %s72_s30 = int_to_ptr.hbm [resolvable:$true] %s71_s30 }
   0xd   :  { %53 = dma.hbm_to_vmem [thread:$0]  %s46_s23, 768, %s48_s26, [#allocation6], %s2190_s27, %s2190_s27, %s2191_s28  }
   0xe   :  { %s2192_s10 = smov [#allocation10]   ;;  %s85_s13 = sshll.u32 %s2320_s6, 4  ;;  %s86_s13 = int_to_ptr.hbm [resolvable:$true] %s85_s13 }
   0xf   :  { %s73_s11 = sshll.u32 %s2192_s10, 4  ;;  %s2193_s14 = smov [#allocation11]   ;;  %s74_s11 = int_to_ptr.vmem [resolvable:$true] %s73_s11 }
  0x10   :  { %79 = dma.hbm_to_vmem [thread:$0]  %s72_s30, 16384, %s74_s11, [#allocation9], %s2190_s27, %s2190_s27, %s2191_s28  }
  0x11   :  { %s87_s15 = sshll.u32 %s2193_s14, 4  ;;  %s88_s15 = int_to_ptr.vmem [resolvable:$true] %s87_s15 }
  0x12   :  { %90 = dma.hbm_to_vmem [thread:$0]  %s86_s13, 64, %s88_s15, [#allocation12]  }
  0x13   :  { %2178 = dma.done.wait [#allocation4], 128  }
  0x14   :  { %2179 = vsyncadd [#allocation4], 4294967168 }
  0x15   :  { %2180 = dma.done.wait [#allocation6], 896  }
  0x16   :  { %2181 = vsyncadd [#allocation6], 4294966400 }
  0x17   :  { %2182 = dma.done.wait [#allocation9], 16640  }
  0x18   :  { %2183 = vsyncadd [#allocation9], 4294950656 }
  0x19   :  { %2184 = dma.done.wait [#allocation12], 64  }
  0x1a   :  { %2185 = vsyncadd [#allocation12], 4294967232  ;;  %v130_v0 = vld [vmem:[#allocation8] sm:$0xff]  ;;  %vm146_vm0 = vcmask 1043456   ;;  %v131_v1 = vld [vmem:[#allocation8 + $0x8] sm:$0xff]  ;;  %vm142_vm1 = vcmask 64512  }
  0x1b   :  { %v122_v2 = vld [vmem:[#allocation5] sm:$0xff]  ;;  %v134_v3 = vunpack.c.l.b16 %v130_v0  ;;  %v135_v4 = vunpack.c.h.b16 %v130_v0  ;;  %v136_v5 = vunpack.c.l.b16 %v131_v1  ;;  %v137_v6 = vunpack.c.h.b16 %v131_v1  ;;  %v128_v7 = vld [vmem:[#allocation7 + $0x20] sm:$0xff]  ;;  %v129_v8 = vld [vmem:[#allocation7 + $0x28] sm:$0xff] }
  0x1c   :  { %v123_v9 = vpack.c.bf16 %v122_v2, %v122_v2  ;;  %v225_v10 = vunpack.c.l.b16 %v128_v7  ;;  %v226_v11 = vunpack.c.h.b16 %v128_v7  ;;  %v227_v12 = vunpack.c.l.b16 %v129_v8  ;;  %v1364_v17 = vld [vmem:[#allocation7] sm:$0xf]  ;;  %v1896_v22 = vld [vmem:[#allocation7 + $0xc] sm:$0xf0]  ;;  %v1894_v23 = vld [vmem:[#allocation7 + $0x4] sm:$0xf] }
  0x1d   :  { %v138_v13 = vpack.c.b16 %v134_v3, %v134_v3  ;;  %v139_v14 = vpack.c.b16 %v135_v4, %v135_v4  ;;  %v140_v15 = vpack.c.b16 %v136_v5, %v136_v5  ;;  %v141_v16 = vpack.c.b16 %v137_v6, %v137_v6  ;;  %v1366_v24 = vld [vmem:[#allocation7 + $0x10] sm:$0xf0]  ;;  %v1496_v29 = vld [vmem:[#allocation10 + $0xe0] sm:$0xf]  ;;  %v1372_v33 = vld [vmem:[#allocation7 + $0x8] sm:$0xf] }
  0x1e   :  { %v233_v18 = vpack.c.b16 %v225_v10, %v225_v10  ;;  %v234_v19 = vpack.c.b16 %v226_v11, %v226_v11  ;;  %v235_v20 = vpack.c.b16 %v227_v12, %v227_v12  ;;  %v228_v21 = vunpack.c.h.b16 %v129_v8  ;;  %v1897_v34 = vld [vmem:[#allocation7 + $0x14] sm:$0xf0]  ;;  %v1928_v35 = vld [vmem:[#allocation10 + $0xec] sm:$0xf0]  ;;  %v1624_v36 = vld [vmem:[#allocation10 + $0x1e0] sm:$0xf] }
  0x1f   :  { %v148_v25 = vsel %vm146_vm0, %v138_v13, 0  ;;  %v151_v26 = vsel %vm146_vm0, %v139_v14, 0  ;;  %v154_v27 = vsel %vm146_vm0, %v140_v15, 0  ;;  %v157_v28 = vsel %vm146_vm0, %v141_v16, 0  ;;  %v1895_v37 = vld [vmem:[#allocation7 + $0xc] sm:$0xf] }
  0x20   :  { %166 = vmatpush.bf16.msra.mxu0 %v148_v25  ;;  %179 = vmatpush.bf16.msra.mxu1 %v151_v26  ;;  %v246_v30 = vsel %vm146_vm0, %v233_v18, 0  ;;  %v249_v31 = vsel %vm146_vm0, %v234_v19, 0  ;;  %v236_v32 = vpack.c.b16 %v228_v21, %v228_v21  ;;  %v1374_v38 = vld [vmem:[#allocation7 + $0x18] sm:$0xf0]  ;;  %v1960_v39 = vld [vmem:[#allocation10 + $0x1ec] sm:$0xf0]  ;;  %v1365_v42 = vor.u32 %v1896_v22, %v1364_v17 }
  0x21   :  { %192 = vmatpush.bf16.msra.mxu2 %v154_v27  ;;  %205 = vmatpush.bf16.msra.mxu3 %v157_v28  ;;  %v252_v40 = vsel %vm146_vm0, %v235_v20, 0  ;;  %v1369_v43 = vor.u32 %v1894_v23, %v1366_v24  ;;  %v1480_v44 = vld [vmem:[#allocation10 + $0xc0] sm:$0xf]  ;;  %v1924_v45 = vld [vmem:[#allocation10 + $0xcc] sm:$0xf0]  ;;  %v1497_v46 = vor.u32 %v1928_v35, %v1496_v29  ;;  %v1625_v47 = vor.u32 %v1960_v39, %v1624_v36 }
  0x22   :  { %v255_v41 = vsel %vm146_vm0, %v236_v32, 0  ;;  %v1752_v48 = vld [vmem:[#allocation10 + $0x2e0] sm:$0xf]  ;;  %v1992_v49 = vld [vmem:[#allocation10 + $0x2ec] sm:$0xf0]  ;;  %v1373_v54 = vor.u32 %v1897_v34, %v1372_v33  ;;  %v1377_v55 = vor.u32 %v1895_v37, %v1374_v38  ;;  %v1481_v60 = vor.u32 %v1924_v45, %v1480_v44 }
  0x23   :  { %1358 = vmatmul.msk.bf16.vlgmr.msra.gmra.mxu0 %vm142_vm1, %v123_v9  ;;  %1359 = vmatmul.msk.bf16.vlgmr.msra.gmra.mxu1 %vm142_vm1, %v123_v9  ;;  %v1880_v50 = vld [vmem:[#allocation10 + $0x3e0] sm:$0xf]  ;;  %v1956_v52 = vld [vmem:[#allocation10 + $0x1cc] sm:$0xf0]  ;;  %v1753_v56 = vor.u32 %v1992_v49, %v1752_v48  ;;  %vm241_vm2 = vcmask 195584   ;;  %vm1348_vm3 = vcmask 7168  }
  0x24   :  { %263 = vmatpush.bf16.msrb.mxu0 %v246_v30  ;;  %276 = vmatpush.bf16.msrb.mxu1 %v249_v31  ;;  %v1608_v51 = vld [vmem:[#allocation10 + $0x1c0] sm:$0xf]  ;;  %v2024_v53 = vld [vmem:[#allocation10 + $0x3ec] sm:$0xf0] }
  0x25   :  { %1360 = vmatmul.msk.bf16.vlgmr.msra.gmra.mxu2 %vm142_vm1, %v123_v9  ;;  %1361 = vmatmul.msk.bf16.vlgmr.msra.gmra.mxu3 %vm142_vm1, %v123_v9  ;;  %v1881_v57 = vor.u32 %v2024_v53, %v1880_v50  ;;  %v1464_v58 = vld [vmem:[#allocation10 + $0xa0] sm:$0xf]  ;;  %v1609_v61 = vor.u32 %v1956_v52, %v1608_v51  ;;  %v1988_v62 = vld [vmem:[#allocation10 + $0x2cc] sm:$0xf0] }
  0x26   :  { %289 = vmatpush.bf16.msrb.mxu2 %v252_v40  ;;  %302 = vmatpush.bf16.msrb.mxu3 %v255_v41  ;;  %v1736_v59 = vld [vmem:[#allocation10 + $0x2c0] sm:$0xf]  ;;  %v2020_v0 = vld [vmem:[#allocation10 + $0x3cc] sm:$0xf0] }
  0x27   :  { %v1864_v63 = vld [vmem:[#allocation10 + $0x3c0] sm:$0xf]  ;;  %v1920_v1 = vld [vmem:[#allocation10 + $0xac] sm:$0xf0]  ;;  %v1737_v4 = vor.u32 %v1988_v62, %v1736_v59 }
  0x28   :  { %264 = vmatpush.bf16.msrb.mxu0 %v1365_v42  ;;  %277 = vmatpush.bf16.msrb.mxu1 %v1369_v43  ;;  %v1592_v2 = vld [vmem:[#allocation10 + $0x1a0] sm:$0xf]  ;;  %v1952_v3 = vld [vmem:[#allocation10 + $0x1ac] sm:$0xf0]  ;;  %v1865_v5 = vor.u32 %v2020_v0, %v1864_v63  ;;  %v1465_v7 = vor.u32 %v1920_v1, %v1464_v58 }
  0x29   :  { %v1720_v6 = vld [vmem:[#allocation10 + $0x2a0] sm:$0xf]  ;;  %v1593_v8 = vor.u32 %v1952_v3, %v1592_v2  ;;  %v1984_v9 = vld [vmem:[#allocation10 + $0x2ac] sm:$0xf0]  ;;  %v1926_v2 = vld [vmem:[#allocation10 + $0xe4] sm:$0xf] }
  0x2a   :  { %290 = vmatpush.bf16.msrb.mxu2 %v1373_v54  ;;  %303 = vmatpush.bf16.msrb.mxu3 %v1377_v55  ;;  %v1848_v10 = vld [vmem:[#allocation10 + $0x3a0] sm:$0xf]  ;;  %v2016_v11 = vld [vmem:[#allocation10 + $0x3ac] sm:$0xf0]  ;;  %v1721_v17 = vor.u32 %v1984_v9, %v1720_v6  ;;  %v1958_v6 = vld [vmem:[#allocation10 + $0x1e4] sm:$0xf] }
  0x2b   :  { %v120_v12 = vld [vmem:[#allocation3] sm:$0xff]  ;;  %v1448_v13 = vld [vmem:[#allocation10 + $0x80] sm:$0xf]  ;;  %v1849_v18 = vor.u32 %v2016_v11, %v1848_v10 }
  0x2c   :  { %1109 = vmatpush.bf16.msra.mxu0 %v1497_v46  ;;  %1122 = vmatpush.bf16.msra.mxu1 %v1625_v47  ;;  %v1916_v14 = vld [vmem:[#allocation10 + $0x8c] sm:$0xf0]  ;;  %v1576_v15 = vld [vmem:[#allocation10 + $0x180] sm:$0xf]  ;;  %v121_v20 = vpack.c.bf16 %v120_v12, %v120_v12  ;;  %v1922_v12 = vld [vmem:[#allocation10 + $0xc4] sm:$0xf] }
  0x2d   :  { %v1948_v16 = vld [vmem:[#allocation10 + $0x18c] sm:$0xf0]  ;;  %v1704_v19 = vld [vmem:[#allocation10 + $0x280] sm:$0xf]  ;;  %v1449_v24 = vor.u32 %v1916_v14, %v1448_v13  ;;  %v1482_v13 = vld [vmem:[#allocation10 + $0xd0] sm:$0xf0] }
  0x2e   :  { %1135 = vmatpush.bf16.msra.mxu2 %v1753_v56  ;;  %1148 = vmatpush.bf16.msra.mxu3 %v1881_v57  ;;  %v1980_v21 = vld [vmem:[#allocation10 + $0x28c] sm:$0xf0]  ;;  %v1832_v22 = vld [vmem:[#allocation10 + $0x380] sm:$0xf]  ;;  %v1577_v25 = vor.u32 %v1948_v16, %v1576_v15  ;;  %v1954_v14 = vld [vmem:[#allocation10 + $0x1c4] sm:$0xf]  ;;  %v1485_v15 = vor.u32 %v1922_v12, %v1482_v13 }
  0x2f   :  { %v2012_v23 = vld [vmem:[#allocation10 + $0x38c] sm:$0xf0]  ;;  %v1432_v26 = vld [vmem:[#allocation10 + $0x60] sm:$0xf]  ;;  %v1705_v30 = vor.u32 %v1980_v21, %v1704_v19  ;;  %v1610_v16 = vld [vmem:[#allocation10 + $0x1d0] sm:$0xf0] }
  0x30   :  { %1110 = vmatpush.bf16.msra.mxu0 %v1481_v60  ;;  %1123 = vmatpush.bf16.msra.mxu1 %v1609_v61  ;;  %v1912_v27 = vld [vmem:[#allocation10 + $0x6c] sm:$0xf0]  ;;  %v1560_v28 = vld [vmem:[#allocation10 + $0x160] sm:$0xf]  ;;  %v1833_v31 = vor.u32 %v2012_v23, %v1832_v22  ;;  %v1613_v19 = vor.u32 %v1954_v14, %v1610_v16  ;;  %v1990_v23 = vld [vmem:[#allocation10 + $0x2e4] sm:$0xf] }
  0x31   :  { %v1944_v29 = vld [vmem:[#allocation10 + $0x16c] sm:$0xf0]  ;;  %v1688_v32 = vld [vmem:[#allocation10 + $0x260] sm:$0xf]  ;;  %v1433_v36 = vor.u32 %v1912_v27, %v1432_v26  ;;  %v2022_v26 = vld [vmem:[#allocation10 + $0x3e4] sm:$0xf] }
  0x32   :  { %1136 = vmatpush.bf16.msra.mxu2 %v1737_v4  ;;  %1149 = vmatpush.bf16.msra.mxu3 %v1865_v5  ;;  %v1976_v33 = vld [vmem:[#allocation10 + $0x26c] sm:$0xf0]  ;;  %v1816_v34 = vld [vmem:[#allocation10 + $0x360] sm:$0xf]  ;;  %v1561_v37 = vor.u32 %v1944_v29, %v1560_v28  ;;  %v1498_v5 = vld [vmem:[#allocation10 + $0xf0] sm:$0xf0] }
  0x33   :  { %1378 = vmatmul.msk.bf16.vlgmr.msrb.gmra.mxu0 %vm241_vm2, %v121_v20  ;;  %1379 = vmatmul.msk.bf16.vlgmr.msrb.gmra.mxu1 %vm241_vm2, %v121_v20  ;;  %v2008_v35 = vld [vmem:[#allocation10 + $0x36c] sm:$0xf0]  ;;  %v1416_v38 = vld [vmem:[#allocation10 + $0x40] sm:$0xf]  ;;  %v1689_v42 = vor.u32 %v1976_v33, %v1688_v32  ;;  %v1501_v10 = vor.u32 %v1926_v2, %v1498_v5  ;;  %v1882_v27 = vld [vmem:[#allocation10 + $0x3f0] sm:$0xf0] }
  0x34   :  { %1111 = vmatpush.bf16.msra.mxu0 %v1465_v7  ;;  %1124 = vmatpush.bf16.msra.mxu1 %v1593_v8  ;;  %v1908_v39 = vld [vmem:[#allocation10 + $0x4c] sm:$0xf0]  ;;  %v1544_v40 = vld [vmem:[#allocation10 + $0x140] sm:$0xf]  ;;  %v1817_v43 = vor.u32 %v2008_v35, %v1816_v34  ;;  %v1626_v7 = vld [vmem:[#allocation10 + $0x1f0] sm:$0xf0]  ;;  %v1885_v29 = vor.u32 %v2022_v26, %v1882_v27 }
  0x35   :  { %1380 = vmatmul.msk.bf16.vlgmr.msrb.gmra.mxu2 %vm241_vm2, %v121_v20  ;;  %1381 = vmatmul.msk.bf16.vlgmr.msrb.gmra.mxu3 %vm241_vm2, %v121_v20  ;;  %v1940_v41 = vld [vmem:[#allocation10 + $0x14c] sm:$0xf0]  ;;  %v1672_v44 = vld [vmem:[#allocation10 + $0x240] sm:$0xf]  ;;  %v1417_v48 = vor.u32 %v1908_v39, %v1416_v38  ;;  %v1629_v11 = vor.u32 %v1958_v6, %v1626_v7  ;;  %v1950_v32 = vld [vmem:[#allocation10 + $0x1a4] sm:$0xf] }
  0x36   :  { %1137 = vmatpush.bf16.msra.mxu2 %v1721_v17  ;;  %1150 = vmatpush.bf16.msra.mxu3 %v1849_v18  ;;  %v1972_v45 = vld [vmem:[#allocation10 + $0x24c] sm:$0xf0]  ;;  %v1800_v46 = vld [vmem:[#allocation10 + $0x340] sm:$0xf]  ;;  %v1545_v49 = vor.u32 %v1940_v41, %v1544_v40  ;;  %v1594_v34 = vld [vmem:[#allocation10 + $0x1b0] sm:$0xf0] }
  0x37   :  { %v2004_v47 = vld [vmem:[#allocation10 + $0x34c] sm:$0xf0]  ;;  %v1400_v50 = vld [vmem:[#allocation10 + $0x20] sm:$0xf]  ;;  %v1673_v54 = vor.u32 %v1972_v45, %v1672_v44  ;;  %v1597_v35 = vor.u32 %v1950_v32, %v1594_v34  ;;  %v2018_v38 = vld [vmem:[#allocation10 + $0x3c4] sm:$0xf] }
  0x38   :  { %1112 = vmatpush.bf16.msra.mxu0 %v1449_v24  ;;  %1125 = vmatpush.bf16.msra.mxu1 %v1577_v25  ;;  %v1904_v51 = vld [vmem:[#allocation10 + $0x2c] sm:$0xf0]  ;;  %v1528_v52 = vld [vmem:[#allocation10 + $0x120] sm:$0xf]  ;;  %v1801_v55 = vor.u32 %v2004_v47, %v1800_v46  ;;  %v1754_v25 = vld [vmem:[#allocation10 + $0x2f0] sm:$0xf0] }
  0x39   :  { %v1936_v53 = vld [vmem:[#allocation10 + $0x12c] sm:$0xf0]  ;;  %v1656_v56 = vld [vmem:[#allocation10 + $0x220] sm:$0xf]  ;;  %v1401_v60 = vor.u32 %v1904_v51, %v1400_v50  ;;  %v1757_v28 = vor.u32 %v1990_v23, %v1754_v25  ;;  %v1866_v40 = vld [vmem:[#allocation10 + $0x3d0] sm:$0xf0] }
  0x3a   :  { %1138 = vmatpush.bf16.msra.mxu2 %v1705_v30  ;;  %1151 = vmatpush.bf16.msra.mxu3 %v1833_v31  ;;  %v1968_v57 = vld [vmem:[#allocation10 + $0x22c] sm:$0xf0]  ;;  %v1784_v58 = vld [vmem:[#allocation10 + $0x320] sm:$0xf]  ;;  %v1529_v61 = vor.u32 %v1936_v53, %v1528_v52  ;;  %v1918_v30 = vld [vmem:[#allocation10 + $0xa4] sm:$0xf]  ;;  %v1869_v41 = vor.u32 %v2018_v38, %v1866_v40 }
  0x3b   :  { %v2000_v59 = vld [vmem:[#allocation10 + $0x32c] sm:$0xf0]  ;;  %v1384_v62 = vld [vmem:[#allocation10] sm:$0xf]  ;;  %v1657_v3 = vor.u32 %v1968_v57, %v1656_v56  ;;  %v1466_v31 = vld [vmem:[#allocation10 + $0xb0] sm:$0xf0] }
  0x3c   :  { %1113 = vmatpush.bf16.msra.mxu0 %v1433_v36  ;;  %1126 = vmatpush.bf16.msra.mxu1 %v1561_v37  ;;  %v1900_v63 = vld [vmem:[#allocation10 + $0xc] sm:$0xf0]  ;;  %v1512_v0 = vld [vmem:[#allocation10 + $0x100] sm:$0xf]  ;;  %v1785_v4 = vor.u32 %v2000_v59, %v1784_v58  ;;  %v1469_v33 = vor.u32 %v1918_v30, %v1466_v31  ;;  %v1986_v36 = vld [vmem:[#allocation10 + $0x2c4] sm:$0xf] }
  0x3d   :  { %v1932_v1 = vld [vmem:[#allocation10 + $0x10c] sm:$0xf0]  ;;  %v1385_v8 = vor.u32 %v1900_v63, %v1384_v62  ;;  %v1640_v17 = vld [vmem:[#allocation10 + $0x200] sm:$0xf]  ;;  %v1738_v37 = vld [vmem:[#allocation10 + $0x2d0] sm:$0xf0] }
  0x3e   :  { %1139 = vmatpush.bf16.msra.mxu2 %v1689_v42  ;;  %1152 = vmatpush.bf16.msra.mxu3 %v1817_v43  ;;  %v1513_v9 = vor.u32 %v1932_v1, %v1512_v0  ;;  %v1964_v18 = vld [vmem:[#allocation10 + $0x20c] sm:$0xf0]  ;;  %v1768_v21 = vld [vmem:[#allocation10 + $0x300] sm:$0xf]  ;;  %v1741_v39 = vor.u32 %v1986_v36, %v1738_v37  ;;  %v1914_v42 = vld [vmem:[#allocation10 + $0x84] sm:$0xf] }
  0x3f   :  { %v1641_v20 = vor.u32 %v1964_v18, %v1640_v17  ;;  %v1996_v22 = vld [vmem:[#allocation10 + $0x30c] sm:$0xf0]  ;;  %v1450_v43 = vld [vmem:[#allocation10 + $0x90] sm:$0xf0]  ;;  %v1946_v44 = vld [vmem:[#allocation10 + $0x184] sm:$0xf] }
  0x40   :  { %1114 = vmatpush.bf16.msra.mxu0 %v1417_v48  ;;  %1127 = vmatpush.bf16.msra.mxu1 %v1545_v49  ;;  %v1769_v24 = vor.u32 %v1996_v22, %v1768_v21  ;;  %v1453_v45 = vor.u32 %v1914_v42, %v1450_v43  ;;  %v1578_v46 = vld [vmem:[#allocation10 + $0x190] sm:$0xf0]  ;;  %v1982_v48 = vld [vmem:[#allocation10 + $0x2a4] sm:$0xf] }
  0x41   :  { %v1581_v47 = vor.u32 %v1946_v44, %v1578_v46  ;;  %v1722_v49 = vld [vmem:[#allocation10 + $0x2b0] sm:$0xf0]  ;;  %v2014_v50 = vld [vmem:[#allocation10 + $0x3a4] sm:$0xf] }
  0x42   :  { %1140 = vmatpush.bf16.msra.mxu2 %v1673_v54  ;;  %1153 = vmatpush.bf16.msra.mxu3 %v1801_v55  ;;  %v1725_v51 = vor.u32 %v1982_v48, %v1722_v49  ;;  %v1850_v52 = vld [vmem:[#allocation10 + $0x3b0] sm:$0xf0]  ;;  %v1910_v53 = vld [vmem:[#allocation10 + $0x64] sm:$0xf] }
  0x43   :  { %v1434_v54 = vld [vmem:[#allocation10 + $0x70] sm:$0xf0]  ;;  %v1853_v55 = vor.u32 %v2014_v50, %v1850_v52  ;;  %v1942_v57 = vld [vmem:[#allocation10 + $0x164] sm:$0xf]  ;;  %v309_v50 = vld [vmem:[%s2318_s4] sm:$0xf] }
  0x44   :  { %1115 = vmatpush.bf16.msra.mxu0 %v1401_v60  ;;  %1128 = vmatpush.bf16.msra.mxu1 %v1529_v61  ;;  %v1437_v56 = vor.u32 %v1910_v53, %v1434_v54  ;;  %v1562_v58 = vld [vmem:[#allocation10 + $0x170] sm:$0xf0]  ;;  %v1978_v60 = vld [vmem:[#allocation10 + $0x284] sm:$0xf]  ;;  %v311_v53 = vperm.slane %v309_v50, 0  ;;  %v312_v54 = vperm.slane %v309_v50, 1 }
  0x45   :  { %v1565_v59 = vor.u32 %v1942_v57, %v1562_v58  ;;  %v1706_v61 = vld [vmem:[#allocation10 + $0x290] sm:$0xf0]  ;;  %v2010_v62 = vld [vmem:[#allocation10 + $0x384] sm:$0xf] }
  0x46   :  { %1141 = vmatpush.bf16.msra.mxu2 %v1657_v3  ;;  %1154 = vmatpush.bf16.msra.mxu3 %v1785_v4  ;;  %v1709_v63 = vor.u32 %v1978_v60, %v1706_v61  ;;  %v1834_v0 = vld [vmem:[#allocation10 + $0x390] sm:$0xf0]  ;;  %v1906_v2 = vld [vmem:[#allocation10 + $0x44] sm:$0xf] }
  0x47   :  { %v1837_v1 = vor.u32 %v2010_v62, %v1834_v0  ;;  %v1418_v3 = vld [vmem:[#allocation10 + $0x50] sm:$0xf0]  ;;  %v1938_v4 = vld [vmem:[#allocation10 + $0x144] sm:$0xf]  ;;  %v1929_v62 = vld [vmem:[#allocation10 + $0xf4] sm:$0xf0] }
  0x48   :  { %1116 = vmatpush.bf16.msra.mxu0 %v1385_v8  ;;  %1129 = vmatpush.bf16.msra.mxu1 %v1513_v9  ;;  %v1421_v5 = vor.u32 %v1906_v2, %v1418_v3  ;;  %v1546_v6 = vld [vmem:[#allocation10 + $0x150] sm:$0xf0]  ;;  %v1974_v8 = vld [vmem:[#allocation10 + $0x264] sm:$0xf]  ;;  %v1961_v0 = vld [vmem:[#allocation10 + $0x1f4] sm:$0xf0] }
  0x49   :  { %v1549_v7 = vor.u32 %v1938_v4, %v1546_v6  ;;  %v1690_v9 = vld [vmem:[#allocation10 + $0x270] sm:$0xf0]  ;;  %v1902_v14 = vld [vmem:[#allocation10 + $0x24] sm:$0xf]  ;;  %v313_v3 = vperm.slane %v309_v50, 2  ;;  %v314_v4 = vperm.slane %v309_v50, 3 }
  0x4a   :  { %1142 = vmatpush.bf16.msra.mxu2 %v1641_v20  ;;  %1155 = vmatpush.bf16.msra.mxu3 %v1769_v24  ;;  %v1818_v12 = vld [vmem:[#allocation10 + $0x370] sm:$0xf0]  ;;  %v1934_v17 = vld [vmem:[#allocation10 + $0x124] sm:$0xf] }
  0x4b   :  { %v1530_v18 = vld [vmem:[#allocation10 + $0x130] sm:$0xf0]  ;;  %v1970_v20 = vld [vmem:[#allocation10 + $0x244] sm:$0xf] }
  0x4c   :  { %1161 = vmatpush.bf16.msrb.mxu0 %v1501_v10  ;;  %1174 = vmatpush.bf16.msrb.mxu1 %v1629_v11  ;;  %v2006_v10 = vld [vmem:[#allocation10 + $0x364] sm:$0xf]  ;;  %v1693_v11 = vor.u32 %v1974_v8, %v1690_v9  ;;  %v1674_v21 = vld [vmem:[#allocation10 + $0x250] sm:$0xf0]  ;;  %v1925_v8 = vld [vmem:[#allocation10 + $0xd4] sm:$0xf0] }
  0x4d   :  { %v1821_v13 = vor.u32 %v2006_v10, %v1818_v12  ;;  %v2002_v22 = vld [vmem:[#allocation10 + $0x344] sm:$0xf]  ;;  %v1677_v23 = vor.u32 %v1970_v20, %v1674_v21  ;;  %v1802_v24 = vld [vmem:[#allocation10 + $0x350] sm:$0xf0]  ;;  %v1760_v20 = vld [vmem:[#allocation10 + $0x2e8] sm:$0xf] }
  0x4e   :  { %1187 = vmatpush.bf16.msrb.mxu2 %v1757_v28  ;;  %1200 = vmatpush.bf16.msrb.mxu3 %v1885_v29  ;;  %v1805_v25 = vor.u32 %v2002_v22, %v1802_v24  ;;  %v1898_v26 = vld [vmem:[#allocation10 + $0x4] sm:$0xf]  ;;  %v1386_v27 = vld [vmem:[#allocation10 + $0x10] sm:$0xf0]  ;;  %v1993_v21 = vld [vmem:[#allocation10 + $0x2f4] sm:$0xf0] }
  0x4f   :  { %v1930_v28 = vld [vmem:[#allocation10 + $0x104] sm:$0xf]  ;;  %v1389_v29 = vor.u32 %v1898_v26, %v1386_v27  ;;  %v1514_v30 = vld [vmem:[#allocation10 + $0x110] sm:$0xf0]  ;;  %v1888_v22 = vld [vmem:[#allocation10 + $0x3e8] sm:$0xf] }
  0x50   :  { %1162 = vmatpush.bf16.msrb.mxu0 %v1485_v15  ;;  %1175 = vmatpush.bf16.msrb.mxu1 %v1613_v19  ;;  %v1402_v15 = vld [vmem:[#allocation10 + $0x30] sm:$0xf0]  ;;  %v1533_v19 = vor.u32 %v1934_v17, %v1530_v18  ;;  %v1517_v31 = vor.u32 %v1930_v28, %v1514_v30  ;;  %v1966_v32 = vld [vmem:[#allocation10 + $0x224] sm:$0xf]  ;;  %v2025_v26 = vld [vmem:[#allocation10 + $0x3f4] sm:$0xf0] }
  0x51   :  { %v1405_v16 = vor.u32 %v1902_v14, %v1402_v15  ;;  %v1998_v34 = vld [vmem:[#allocation10 + $0x324] sm:$0xf]  ;;  %v1786_v36 = vld [vmem:[#allocation10 + $0x330] sm:$0xf0]  ;;  %v1957_v14 = vld [vmem:[#allocation10 + $0x1d4] sm:$0xf0] }
  0x52   :  { %1188 = vmatpush.bf16.msrb.mxu2 %v1741_v39  ;;  %1201 = vmatpush.bf16.msrb.mxu3 %v1869_v41  ;;  %v1789_v37 = vor.u32 %v1998_v34, %v1786_v36  ;;  %v1962_v38 = vld [vmem:[#allocation10 + $0x204] sm:$0xf]  ;;  %v1642_v39 = vld [vmem:[#allocation10 + $0x210] sm:$0xf0]  ;;  %v1472_v27 = vld [vmem:[#allocation10 + $0xa8] sm:$0xf]  ;;  %v1889_v34 = vor.u32 %v2025_v26, %v1888_v22 }
  0x53   :  { %v1645_v40 = vor.u32 %v1962_v38, %v1642_v39  ;;  %v1994_v41 = vld [vmem:[#allocation10 + $0x304] sm:$0xf]  ;;  %v1770_v42 = vld [vmem:[#allocation10 + $0x310] sm:$0xf0]  ;;  %v1921_v28 = vld [vmem:[#allocation10 + $0xb4] sm:$0xf0] }
  0x54   :  { %1163 = vmatpush.bf16.msrb.mxu0 %v1469_v33  ;;  %1176 = vmatpush.bf16.msrb.mxu1 %v1597_v35  ;;  %v1658_v33 = vld [vmem:[#allocation10 + $0x230] sm:$0xf0]  ;;  %v1773_v43 = vor.u32 %v1994_v41, %v1770_v42  ;;  %v1953_v30 = vld [vmem:[#allocation10 + $0x1b4] sm:$0xf0]  ;;  %v1744_v36 = vld [vmem:[#allocation10 + $0x2c8] sm:$0xf] }
  0x55   :  { %v1661_v35 = vor.u32 %v1966_v32, %v1658_v33  ;;  %v1761_v33 = vor.u32 %v1993_v21, %v1760_v20  ;;  %v1872_v41 = vld [vmem:[#allocation10 + $0x3c8] sm:$0xf]  ;;  %v2021_v42 = vld [vmem:[#allocation10 + $0x3d4] sm:$0xf0] }
  0x56   :  { %1189 = vmatpush.bf16.msrb.mxu2 %v1725_v51  ;;  %1202 = vmatpush.bf16.msrb.mxu3 %v1853_v55  ;;  %v1873_v50 = vor.u32 %v2021_v42, %v1872_v41  ;;  %v1905_v20 = vld [vmem:[#allocation10 + $0x34] sm:$0xf0]  ;;  %v1536_v21 = vld [vmem:[#allocation10 + $0x128] sm:$0xf]  ;;  %v1959_v41 = vld [vmem:[#allocation10 + $0x1ec] sm:$0xf] }
  0x57   :  { %v1937_v22 = vld [vmem:[#allocation10 + $0x134] sm:$0xf0]  ;;  %v1634_v42 = vld [vmem:[#allocation10 + $0x1f8] sm:$0xf0] }
  0x58   :  { %1164 = vmatpush.bf16.msrb.mxu0 %v1453_v45  ;;  %1177 = vmatpush.bf16.msrb.mxu1 %v1581_v47  ;;  %v1973_v26 = vld [vmem:[#allocation10 + $0x254] sm:$0xf0] }
  0x5a   :  { %1190 = vmatpush.bf16.msrb.mxu2 %v1709_v63  ;;  %1203 = vmatpush.bf16.msrb.mxu3 %v1837_v1  ;;  %v1632_v63 = vld [vmem:[#allocation10 + $0x1e8] sm:$0xf] }
  0x5b   :  { %v1633_v6 = vor.u32 %v1961_v0, %v1632_v63  ;;  %v1712_v63 = vld [vmem:[#allocation10 + $0x288] sm:$0xf]  ;;  %v1981_v0 = vld [vmem:[#allocation10 + $0x294] sm:$0xf0] }
  0x5c   :  { %1165 = vmatpush.bf16.msrb.mxu0 %v1437_v56  ;;  %1178 = vmatpush.bf16.msrb.mxu1 %v1565_v59  ;;  %v1504_v59 = vld [vmem:[#allocation10 + $0xe8] sm:$0xf] }
  0x5e   :  { %1191 = vmatpush.bf16.msrb.mxu2 %v1693_v11  ;;  %1204 = vmatpush.bf16.msrb.mxu3 %v1821_v13  ;;  %v1616_v13 = vld [vmem:[#allocation10 + $0x1c8] sm:$0xf] }
  0x60   :  { %1166 = vmatpush.bf16.msrb.mxu0 %v1421_v5  ;;  %1179 = vmatpush.bf16.msrb.mxu1 %v1549_v7  ;;  %v1505_v5 = vor.u32 %v1929_v62, %v1504_v59  ;;  %v1488_v7 = vld [vmem:[#allocation10 + $0xc8] sm:$0xf] }
  0x61   :  { %v1568_v59 = vld [vmem:[#allocation10 + $0x168] sm:$0xf] }
  0x62   :  { %1192 = vmatpush.bf16.msrb.mxu2 %v1677_v23  ;;  %1205 = vmatpush.bf16.msrb.mxu3 %v1805_v25  ;;  %v1617_v25 = vor.u32 %v1957_v14, %v1616_v13  ;;  %v1696_v13 = vld [vmem:[#allocation10 + $0x268] sm:$0xf]  ;;  %v1977_v14 = vld [vmem:[#allocation10 + $0x274] sm:$0xf0] }
  0x64   :  { %1167 = vmatpush.bf16.msrb.mxu0 %v1405_v16  ;;  %1180 = vmatpush.bf16.msrb.mxu1 %v1533_v19  ;;  %v1489_v19 = vor.u32 %v1925_v8, %v1488_v7  ;;  %v1552_v7 = vld [vmem:[#allocation10 + $0x148] sm:$0xf]  ;;  %v1941_v8 = vld [vmem:[#allocation10 + $0x154] sm:$0xf0] }
  0x66   :  { %1193 = vmatpush.bf16.msrb.mxu2 %v1661_v35  ;;  %1206 = vmatpush.bf16.msrb.mxu3 %v1789_v37  ;;  %v1473_v35 = vor.u32 %v1921_v28, %v1472_v27  ;;  %v1989_v37 = vld [vmem:[#allocation10 + $0x2d4] sm:$0xf0]  ;;  %v1808_v27 = vld [vmem:[#allocation10 + $0x348] sm:$0xf] }
  0x67   :  { %v2005_v28 = vld [vmem:[#allocation10 + $0x354] sm:$0xf0] }
  0x68   :  { %1168 = vmatpush.bf16.msrb.mxu0 %v1389_v29  ;;  %1181 = vmatpush.bf16.msrb.mxu1 %v1517_v31  ;;  %v1600_v29 = vld [vmem:[#allocation10 + $0x1a8] sm:$0xf] }
  0x6a   :  { %1194 = vmatpush.bf16.msrb.mxu2 %v1645_v40  ;;  %1207 = vmatpush.bf16.msrb.mxu3 %v1773_v43  ;;  %v1601_v40 = vor.u32 %v1953_v30, %v1600_v29  ;;  %v1456_v43 = vld [vmem:[#allocation10 + $0x88] sm:$0xf]  ;;  %v1537_v30 = vor.u32 %v1937_v22, %v1536_v21  ;;  %v1947_v21 = vld [vmem:[#allocation10 + $0x18c] sm:$0xf]  ;;  %v1586_v22 = vld [vmem:[#allocation10 + $0x198] sm:$0xf0] }
  0xa0   :  { %v168_v44 = vpop.f32.mrf.mxu0  ;;  %v181_v45 = vpop.f32.mrf.mxu1 }
  0xa8   :  { %v194_v46 = vpop.f32.mrf.mxu2  ;;  %v207_v47 = vpop.f32.mrf.mxu3 }
  0xa9   :  { %v170_v48 = vpop.f32.mrf.mxu0  ;;  %v183_v49 = vpop.f32.mrf.mxu1 }
  0xaa   :  { %v1949_v48 = vld [vmem:[#allocation10 + $0x194] sm:$0xf0]  ;;  %v1745_v49 = vor.u32 %v1989_v37, %v1744_v36  ;;  %v1506_v36 = vld [vmem:[#allocation10 + $0xf8] sm:$0xf0] }
  0xb0   :  { %v196_v51 = vpop.f32.mrf.mxu2  ;;  %v209_v52 = vpop.f32.mrf.mxu3 }
  0xb1   :  { %v266_v55 = vpop.f32.mrf.mxu0  ;;  %v279_v56 = vpop.f32.mrf.mxu1  ;;  %v1728_v51 = vld [vmem:[#allocation10 + $0x2a8] sm:$0xf] }
  0xb2   :  { %v267_v57 = vadd.f32 %v266_v55, %v168_v44  ;;  %v280_v58 = vadd.f32 %v279_v56, %v181_v45  ;;  %v1856_v55 = vld [vmem:[#allocation10 + $0x3a8] sm:$0xf]  ;;  %v2017_v56 = vld [vmem:[#allocation10 + $0x3b4] sm:$0xf0] }
  0xb3   :  { %v1857_v62 = vor.u32 %v2017_v56, %v1856_v55  ;;  %v1618_v56 = vld [vmem:[#allocation10 + $0x1d8] sm:$0xf0] }
  0xb4   :  { %v319_v60 = vadd.f32 %v311_v53, %v267_v57  ;;  %v320_v61 = vadd.f32 %v312_v54, %v280_v58  ;;  %v1985_v54 = vld [vmem:[#allocation10 + $0x2b4] sm:$0xf0]  ;;  %v1440_v57 = vld [vmem:[#allocation10 + $0x68] sm:$0xf] }
  0xb5   :  { %v1913_v58 = vld [vmem:[#allocation10 + $0x74] sm:$0xf0] }
  0xb6   :  { %v323_v1 = vmax.f32 %v319_v60, 0.0  ;;  %v324_v2 = vmax.f32 %v320_v61, 0.0  ;;  %v1945_v60 = vld [vmem:[#allocation10 + $0x174] sm:$0xf0]  ;;  %v1729_v61 = vor.u32 %v1985_v54, %v1728_v51  ;;  %v1923_v51 = vld [vmem:[#allocation10 + $0xcc] sm:$0xf] }
  0xb8   :  { %v2281_v9 = vpack.c.bf16 %v323_v1, %v323_v1  ;;  %v2283_v10 = vpack.c.bf16 %v324_v2, %v324_v2  ;;  %v292_v11 = vpop.f32.mrf.mxu2  ;;  %v305_v12 = vpop.f32.mrf.mxu3  ;;  %v1840_v1 = vld [vmem:[#allocation10 + $0x388] sm:$0xf]  ;;  %v2013_v2 = vld [vmem:[#allocation10 + $0x394] sm:$0xf0] }
  0xb9   :  { %v293_v15 = vadd.f32 %v292_v11, %v194_v46  ;;  %v306_v16 = vadd.f32 %v305_v12, %v207_v47  ;;  %v268_v17 = vpop.f32.mrf.mxu0  ;;  %v281_v18 = vpop.f32.mrf.mxu1  ;;  %v1917_v46 = vld [vmem:[#allocation10 + $0x94] sm:$0xf0]  ;;  %v1584_v47 = vld [vmem:[#allocation10 + $0x188] sm:$0xf]  ;;  %v1713_v11 = vor.u32 %v1981_v0, %v1712_v63  ;;  %v1841_v12 = vor.u32 %v2013_v2, %v1840_v1  ;;  %v2023_v63 = vld [vmem:[#allocation10 + $0x3ec] sm:$0xf] }
  0xba   :  { %1117 = vmatmul.bf16.vlgmr.msra.gmra.mxu0 %v2281_v9  ;;  %1130 = vmatmul.bf16.vlgmr.msra.gmra.mxu1 %v2283_v10  ;;  %v1457_v52 = vor.u32 %v1917_v46, %v1456_v43  ;;  %v1585_v53 = vor.u32 %v1949_v48, %v1584_v47  ;;  %v1553_v18 = vor.u32 %v1941_v8, %v1552_v7  ;;  %v1664_v43 = vld [vmem:[#allocation10 + $0x228] sm:$0xf]  ;;  %v2001_v46 = vld [vmem:[#allocation10 + $0x334] sm:$0xf0]  ;;  %v1890_v0 = vld [vmem:[#allocation10 + $0x3f8] sm:$0xf0] }
  0xbb   :  { %v321_v23 = vadd.f32 %v313_v3, %v293_v15  ;;  %v322_v24 = vadd.f32 %v314_v4, %v306_v16  ;;  %1213 = vmatpush.bf16.msra.mxu0 %v1505_v5  ;;  %1226 = vmatpush.bf16.msra.mxu1 %v1633_v6  ;;  %v1441_v3 = vor.u32 %v1913_v58, %v1440_v57  ;;  %v1424_v5 = vld [vmem:[#allocation10 + $0x48] sm:$0xf]  ;;  %v1909_v6 = vld [vmem:[#allocation10 + $0x54] sm:$0xf0]  ;;  %v1951_v7 = vld [vmem:[#allocation10 + $0x1ac] sm:$0xf] }
  0xbc   :  { %v1569_v4 = vor.u32 %v1945_v60, %v1568_v59  ;;  %v1824_v15 = vld [vmem:[#allocation10 + $0x368] sm:$0xf]  ;;  %v2009_v16 = vld [vmem:[#allocation10 + $0x374] sm:$0xf0]  ;;  %v1425_v17 = vor.u32 %v1909_v6, %v1424_v5  ;;  %v1474_v6 = vld [vmem:[#allocation10 + $0xb8] sm:$0xf0] }
  0xbd   :  { %v325_v31 = vmax.f32 %v321_v23, 0.0  ;;  %v326_v32 = vmax.f32 %v322_v24, 0.0  ;;  %v1697_v23 = vor.u32 %v1977_v14, %v1696_v13  ;;  %v1825_v24 = vor.u32 %v2009_v16, %v1824_v15  ;;  %v1648_v57 = vld [vmem:[#allocation10 + $0x208] sm:$0xf]  ;;  %v1965_v58 = vld [vmem:[#allocation10 + $0x214] sm:$0xf0] }
  0xbe   :  { %v1776_v59 = vld [vmem:[#allocation10 + $0x308] sm:$0xf]  ;;  %v1997_v60 = vld [vmem:[#allocation10 + $0x314] sm:$0xf0]  ;;  %v1602_v8 = vld [vmem:[#allocation10 + $0x1b8] sm:$0xf0] }
  0xbf   :  { %v2287_v38 = vpack.c.bf16 %v325_v31, %v325_v31  ;;  %v2289_v39 = vpack.c.bf16 %v326_v32, %v326_v32  ;;  %1214 = vmatpush.bf16.msra.mxu0 %v1489_v19  ;;  %1227 = vmatpush.bf16.msra.mxu1 %v1617_v25  ;;  %v1408_v19 = vld [vmem:[#allocation10 + $0x28] sm:$0xf]  ;;  %v1901_v32 = vld [vmem:[#allocation10 + $0x14] sm:$0xf0]  ;;  %v1777_v5 = vor.u32 %v1997_v60, %v1776_v59  ;;  %v1987_v13 = vld [vmem:[#allocation10 + $0x2cc] sm:$0xf] }
  0xc0   :  { %v294_v44 = vpop.f32.mrf.mxu2  ;;  %v307_v45 = vpop.f32.mrf.mxu3  ;;  %v1680_v25 = vld [vmem:[#allocation10 + $0x248] sm:$0xf]  ;;  %v1409_v29 = vor.u32 %v1905_v20, %v1408_v19  ;;  %v1746_v14 = vld [vmem:[#allocation10 + $0x2d8] sm:$0xf0]  ;;  %v2019_v15 = vld [vmem:[#allocation10 + $0x3cc] sm:$0xf] }
  0xc1   :  { %1143 = vmatmul.bf16.vlgmr.msra.gmra.mxu2 %v2287_v38  ;;  %1156 = vmatmul.bf16.vlgmr.msra.gmra.mxu3 %v2289_v39  ;;  %v1392_v31 = vld [vmem:[#allocation10 + $0x8] sm:$0xf]  ;;  %v1681_v37 = vor.u32 %v1973_v26, %v1680_v25  ;;  %v1969_v44 = vld [vmem:[#allocation10 + $0x234] sm:$0xf0]  ;;  %v1874_v16 = vld [vmem:[#allocation10 + $0x3d8] sm:$0xf0] }
  0xc2   :  { %1239 = vmatpush.bf16.msra.mxu2 %v1761_v33  ;;  %1252 = vmatpush.bf16.msra.mxu3 %v1889_v34  ;;  %v1520_v33 = vld [vmem:[#allocation10 + $0x108] sm:$0xf]  ;;  %v1933_v34 = vld [vmem:[#allocation10 + $0x114] sm:$0xf0]  ;;  %v1393_v47 = vor.u32 %v1901_v32, %v1392_v31  ;;  %v1665_v54 = vor.u32 %v1969_v44, %v1664_v43  ;;  %v1915_v19 = vld [vmem:[#allocation10 + $0x8c] sm:$0xf] }
  0xc3   :  { %1215 = vmatpush.bf16.msra.mxu0 %v1473_v35  ;;  %1228 = vmatpush.bf16.msra.mxu1 %v1601_v40  ;;  %v1927_v35 = vld [vmem:[#allocation10 + $0xec] sm:$0xf]  ;;  %v1809_v40 = vor.u32 %v2005_v28, %v1808_v27  ;;  %v1792_v45 = vld [vmem:[#allocation10 + $0x328] sm:$0xf]  ;;  %v1521_v48 = vor.u32 %v1933_v34, %v1520_v33  ;;  %v1458_v20 = vld [vmem:[#allocation10 + $0x98] sm:$0xf0] }
  0xc4   :  { %v1793_v55 = vor.u32 %v2001_v46, %v1792_v45  ;;  %v1983_v25 = vld [vmem:[#allocation10 + $0x2ac] sm:$0xf]  ;;  %v1730_v26 = vld [vmem:[#allocation10 + $0x2b8] sm:$0xf0] }
  0xc5   :  { %v2015_v27 = vld [vmem:[#allocation10 + $0x3ac] sm:$0xf]  ;;  %v1858_v28 = vld [vmem:[#allocation10 + $0x3b8] sm:$0xf0] }
  0xc6   :  { %1240 = vmatpush.bf16.msra.mxu2 %v1745_v49  ;;  %1253 = vmatpush.bf16.msra.mxu3 %v1873_v50  ;;  %v1509_v49 = vor.u32 %v1927_v35, %v1506_v36  ;;  %v1637_v50 = vor.u32 %v1959_v41, %v1634_v42  ;;  %v1911_v31 = vld [vmem:[#allocation10 + $0x6c] sm:$0xf]  ;;  %v1442_v32 = vld [vmem:[#allocation10 + $0x78] sm:$0xf0]  ;;  %v1733_v35 = vor.u32 %v1983_v25, %v1730_v26 }
  0xc7   :  { %1216 = vmatpush.bf16.msra.mxu0 %v1457_v52  ;;  %1229 = vmatpush.bf16.msra.mxu1 %v1585_v53  ;;  %v1490_v52 = vld [vmem:[#allocation10 + $0xd8] sm:$0xf0]  ;;  %v1955_v53 = vld [vmem:[#allocation10 + $0x1cc] sm:$0xf]  ;;  %v1861_v36 = vor.u32 %v2015_v27, %v1858_v28  ;;  %v1445_v43 = vor.u32 %v1911_v31, %v1442_v32  ;;  %v459_v27 = vld [vmem:[#allocation11] sm:$0xf] }
  0xc8   :  { %v1493_v1 = vor.u32 %v1923_v51, %v1490_v52  ;;  %v1621_v2 = vor.u32 %v1955_v53, %v1618_v56  ;;  %v1943_v33 = vld [vmem:[#allocation10 + $0x16c] sm:$0xf]  ;;  %v1570_v34 = vld [vmem:[#allocation10 + $0x178] sm:$0xf0]  ;;  %v461_v28 = vperm.slane %v459_v27, 0 }
  0xc9   :  { %v2011_v41 = vld [vmem:[#allocation10 + $0x38c] sm:$0xf]  ;;  %v1842_v42 = vld [vmem:[#allocation10 + $0x398] sm:$0xf0]  ;;  %v1573_v44 = vor.u32 %v1943_v33, %v1570_v34 }
  0xca   :  { %1241 = vmatpush.bf16.msra.mxu2 %v1729_v61  ;;  %1254 = vmatpush.bf16.msra.mxu3 %v1857_v62  ;;  %v1991_v61 = vld [vmem:[#allocation10 + $0x2ec] sm:$0xf]  ;;  %v1762_v62 = vld [vmem:[#allocation10 + $0x2f8] sm:$0xf0] }
  0xcb   :  { %1169 = vmatmul.bf16.vlgmr.msrb.gmra.mxu0 %v2281_v9  ;;  %1182 = vmatmul.bf16.vlgmr.msrb.gmra.mxu1 %v2283_v10  ;;  %v1907_v45 = vld [vmem:[#allocation10 + $0x4c] sm:$0xf]  ;;  %v1426_v46 = vld [vmem:[#allocation10 + $0x58] sm:$0xf0] }
  0xcc   :  { %1217 = vmatpush.bf16.msra.mxu0 %v1441_v3  ;;  %1230 = vmatpush.bf16.msra.mxu1 %v1569_v4  ;;  %v1919_v3 = vld [vmem:[#allocation10 + $0xac] sm:$0xf]  ;;  %v1649_v4 = vor.u32 %v1965_v58, %v1648_v57  ;;  %v1698_v52 = vld [vmem:[#allocation10 + $0x278] sm:$0xf0] }
  0xcd   :  { %v1975_v51 = vld [vmem:[#allocation10 + $0x26c] sm:$0xf]  ;;  %v1410_v58 = vld [vmem:[#allocation10 + $0x38] sm:$0xf0] }
  0xce   :  { %1242 = vmatpush.bf16.msra.mxu2 %v1713_v11  ;;  %1255 = vmatpush.bf16.msra.mxu3 %v1841_v12  ;;  %v1765_v11 = vor.u32 %v1991_v61, %v1762_v62  ;;  %v1893_v12 = vor.u32 %v2023_v63, %v1890_v0  ;;  %v2007_v53 = vld [vmem:[#allocation10 + $0x36c] sm:$0xf]  ;;  %v1538_v60 = vld [vmem:[#allocation10 + $0x138] sm:$0xf0]  ;;  %v1701_v61 = vor.u32 %v1975_v51, %v1698_v52  ;;  %v462_v51 = vperm.slane %v459_v27, 1 }
  0xcf   :  { %v1903_v57 = vld [vmem:[#allocation10 + $0x2c] sm:$0xf]  ;;  %v1682_v0 = vld [vmem:[#allocation10 + $0x258] sm:$0xf0] }
  0xd0   :  { %1218 = vmatpush.bf16.msra.mxu0 %v1425_v17  ;;  %1231 = vmatpush.bf16.msra.mxu1 %v1553_v18  ;;  %v1477_v17 = vor.u32 %v1919_v3, %v1474_v6  ;;  %v1605_v18 = vor.u32 %v1951_v7, %v1602_v8  ;;  %v1935_v59 = vld [vmem:[#allocation10 + $0x12c] sm:$0xf]  ;;  %v1413_v3 = vor.u32 %v1903_v57, %v1410_v58  ;;  %v1394_v6 = vld [vmem:[#allocation10 + $0x18] sm:$0xf0]  ;;  %v1321_v57 = vld [vmem:[%s2321_s7] sm:$0xf] }
  0xd1   :  { %1195 = vmatmul.bf16.vlgmr.msrb.gmra.mxu2 %v2287_v38  ;;  %1208 = vmatmul.bf16.vlgmr.msrb.gmra.mxu3 %v2289_v39  ;;  %v1971_v63 = vld [vmem:[#allocation10 + $0x24c] sm:$0xf]  ;;  %v1522_v8 = vld [vmem:[#allocation10 + $0x118] sm:$0xf0] }
  0xd2   :  { %1243 = vmatpush.bf16.msra.mxu2 %v1697_v23  ;;  %1256 = vmatpush.bf16.msra.mxu3 %v1825_v24  ;;  %v1749_v23 = vor.u32 %v1987_v13, %v1746_v14  ;;  %v1877_v24 = vor.u32 %v2019_v15, %v1874_v16  ;;  %v1931_v7 = vld [vmem:[#allocation10 + $0x10c] sm:$0xf]  ;;  %v1666_v14 = vld [vmem:[#allocation10 + $0x238] sm:$0xf0] }
  0xd3   :  { %v1967_v13 = vld [vmem:[#allocation10 + $0x22c] sm:$0xf]  ;;  %v1794_v16 = vld [vmem:[#allocation10 + $0x338] sm:$0xf0] }
  0xd4   :  { %1219 = vmatpush.bf16.msra.mxu0 %v1409_v29  ;;  %1232 = vmatpush.bf16.msra.mxu1 %v1537_v30  ;;  %v1461_v29 = vor.u32 %v1915_v19, %v1458_v20  ;;  %v1589_v30 = vor.u32 %v1947_v21, %v1586_v22  ;;  %v1999_v15 = vld [vmem:[#allocation10 + $0x32c] sm:$0xf]  ;;  %v1669_v19 = vor.u32 %v1967_v13, %v1666_v14  ;;  %v1650_v22 = vld [vmem:[#allocation10 + $0x218] sm:$0xf0] }
  0xd5   :  { %v1797_v20 = vor.u32 %v1999_v15, %v1794_v16  ;;  %v1963_v21 = vld [vmem:[#allocation10 + $0x20c] sm:$0xf] }
  0xd6   :  { %1244 = vmatpush.bf16.msra.mxu2 %v1681_v37  ;;  %1257 = vmatpush.bf16.msra.mxu3 %v1809_v40  ;;  %v1979_v37 = vld [vmem:[#allocation10 + $0x28c] sm:$0xf]  ;;  %v1714_v40 = vld [vmem:[#allocation10 + $0x298] sm:$0xf0]  ;;  %v1653_v25 = vor.u32 %v1963_v21, %v1650_v22 }
  0xd8   :  { %1220 = vmatpush.bf16.msra.mxu0 %v1393_v47  ;;  %1233 = vmatpush.bf16.msra.mxu1 %v1521_v48  ;;  %v1939_v47 = vld [vmem:[#allocation10 + $0x14c] sm:$0xf]  ;;  %v1554_v48 = vld [vmem:[#allocation10 + $0x158] sm:$0xf0] }
  0xd9   :  { %v1557_v56 = vor.u32 %v1939_v47, %v1554_v48 }
  0xda   :  { %1245 = vmatpush.bf16.msra.mxu2 %v1665_v54  ;;  %1258 = vmatpush.bf16.msra.mxu3 %v1793_v55  ;;  %v1826_v54 = vld [vmem:[#allocation10 + $0x378] sm:$0xf0]  ;;  %v1429_v55 = vor.u32 %v1907_v45, %v1426_v46 }
  0xdb   :  { %1221 = vmatmul.bf16.vlgmr.msra.gmra.mxu0 %v2281_v9  ;;  %1234 = vmatmul.bf16.vlgmr.msra.gmra.mxu1 %v2283_v10  ;;  %v1829_v62 = vor.u32 %v2007_v53, %v1826_v54  ;;  %v463_v54 = vperm.slane %v459_v27, 2 }
  0xdc   :  { %1265 = vmatpush.bf16.msrb.mxu0 %v1509_v49  ;;  %1278 = vmatpush.bf16.msrb.mxu1 %v1637_v50  ;;  %v1717_v49 = vor.u32 %v1979_v37, %v1714_v40  ;;  %v1845_v50 = vor.u32 %v2011_v41, %v1842_v42 }
  0xde   :  { %1246 = vmatpush.bf16.msra.mxu2 %v1649_v4  ;;  %1259 = vmatpush.bf16.msra.mxu3 %v1777_v5  ;;  %v1541_v4 = vor.u32 %v1935_v59, %v1538_v60  ;;  %v1899_v5 = vld [vmem:[#allocation10 + $0xc] sm:$0xf] }
  0xe0   :  { %1266 = vmatpush.bf16.msrb.mxu0 %v1493_v1  ;;  %1279 = vmatpush.bf16.msrb.mxu1 %v1621_v2  ;;  %v2003_v1 = vld [vmem:[#allocation10 + $0x34c] sm:$0xf]  ;;  %v1810_v2 = vld [vmem:[#allocation10 + $0x358] sm:$0xf0] }
  0xe1   :  { %1247 = vmatmul.bf16.vlgmr.msra.gmra.mxu2 %v2287_v38  ;;  %1260 = vmatmul.bf16.vlgmr.msra.gmra.mxu3 %v2289_v39 }
  0xe2   :  { %1291 = vmatpush.bf16.msrb.mxu2 %v1765_v11  ;;  %1304 = vmatpush.bf16.msrb.mxu3 %v1893_v12  ;;  %v1685_v11 = vor.u32 %v1971_v63, %v1682_v0  ;;  %v1813_v12 = vor.u32 %v2003_v1, %v1810_v2  ;;  %v1322_v0 = vunpack.c.l.bf16 %v1321_v57  ;;  %v464_v2 = vperm.slane %v459_v27, 3 }
  0xe4   :  { %1267 = vmatpush.bf16.msrb.mxu0 %v1477_v17  ;;  %1280 = vmatpush.bf16.msrb.mxu1 %v1605_v18  ;;  %v1397_v17 = vor.u32 %v1899_v5, %v1394_v6  ;;  %v1525_v18 = vor.u32 %v1931_v7, %v1522_v8  ;;  %v1324_v6 = vperm.slane %v1322_v0, 0  ;;  %v1326_v8 = vperm.slane %v1322_v0, 4 }
  0xe5   :  { %v1327_v21 = vperm.slane %v1322_v0, 6 }
  0xe6   :  { %1292 = vmatpush.bf16.msrb.mxu2 %v1749_v23  ;;  %1305 = vmatpush.bf16.msrb.mxu3 %v1877_v24  ;;  %v1995_v23 = vld [vmem:[#allocation10 + $0x30c] sm:$0xf]  ;;  %v1778_v24 = vld [vmem:[#allocation10 + $0x318] sm:$0xf0] }
  0xe7   :  { %v1781_v26 = vor.u32 %v1995_v23, %v1778_v24 }
  0xe8   :  { %1268 = vmatpush.bf16.msrb.mxu0 %v1461_v29  ;;  %1281 = vmatpush.bf16.msrb.mxu1 %v1589_v30 }
  0xea   :  { %1293 = vmatpush.bf16.msrb.mxu2 %v1733_v35  ;;  %1306 = vmatpush.bf16.msrb.mxu3 %v1861_v36 }
  0xec   :  { %1269 = vmatpush.bf16.msrb.mxu0 %v1445_v43  ;;  %1282 = vmatpush.bf16.msrb.mxu1 %v1573_v44 }
  0xee   :  { %1294 = vmatpush.bf16.msrb.mxu2 %v1717_v49  ;;  %1307 = vmatpush.bf16.msrb.mxu3 %v1845_v50 }
  0xf0   :  { %1270 = vmatpush.bf16.msrb.mxu0 %v1429_v55  ;;  %1283 = vmatpush.bf16.msrb.mxu1 %v1557_v56 }
  0xf2   :  { %1295 = vmatpush.bf16.msrb.mxu2 %v1701_v61  ;;  %1308 = vmatpush.bf16.msrb.mxu3 %v1829_v62 }
  0xf4   :  { %1271 = vmatpush.bf16.msrb.mxu0 %v1413_v3  ;;  %1284 = vmatpush.bf16.msrb.mxu1 %v1541_v4  ;;  %v1325_v4 = vperm.slane %v1322_v0, 2 }
  0xf6   :  { %1296 = vmatpush.bf16.msrb.mxu2 %v1685_v11  ;;  %1309 = vmatpush.bf16.msrb.mxu3 %v1813_v12  ;;  %v1333_v15 = vperm.slane %v1325_v4, 0 }
  0xf8   :  { %1272 = vmatpush.bf16.msrb.mxu0 %v1397_v17  ;;  %1285 = vmatpush.bf16.msrb.mxu1 %v1525_v18  ;;  %v1332_v17 = vperm.slane %v1324_v6, 0 }
  0xfa   :  { %1297 = vmatpush.bf16.msrb.mxu2 %v1669_v19  ;;  %1310 = vmatpush.bf16.msrb.mxu3 %v1797_v20  ;;  %v1334_v19 = vperm.slane %v1326_v8, 0 }
  0xfb   :  { %1273 = vmatmul.bf16.vlgmr.msrb.gmra.mxu0 %v2281_v9  ;;  %1286 = vmatmul.bf16.vlgmr.msrb.gmra.mxu1 %v2283_v10 }
  0xfe   :  { %1298 = vmatpush.bf16.msrb.mxu2 %v1653_v25  ;;  %1311 = vmatpush.bf16.msrb.mxu3 %v1781_v26 }
 0x101   :  { %1299 = vmatmul.bf16.vlgmr.msrb.gmra.mxu2 %v2287_v38  ;;  %1312 = vmatmul.bf16.vlgmr.msrb.gmra.mxu3 %v2289_v39 }
 0x137   :  { %v1118_v29 = vpop.f32.mrf.mxu0  ;;  %v1131_v30 = vpop.f32.mrf.mxu1 }
 0x138   :  { %v1119_v31 = vadd.f32 %v1118_v29, %v461_v28  ;;  %v1335_v29 = vperm.slane %v1327_v21, 0 }
 0x13a   :  { %v1132_v32 = vadd.f32 %v1131_v30, %v1119_v31 }
 0x13f   :  { %v1120_v33 = vpop.f32.mrf.mxu0  ;;  %v1133_v34 = vpop.f32.mrf.mxu1 }
 0x144   :  { %v1144_v35 = vpop.f32.mrf.mxu2  ;;  %v1157_v36 = vpop.f32.mrf.mxu3 }
 0x145   :  { %v1145_v63 = vadd.f32 %v1144_v35, %v1132_v32 }
 0x147   :  { %v1158_v5 = vadd.f32 %v1157_v36, %v1145_v63 }
 0x148   :  { %v1170_v37 = vpop.f32.mrf.mxu0  ;;  %v1183_v9 = vpop.f32.mrf.mxu1 }
 0x149   :  { %v1171_v55 = vadd.f32 %v1170_v37, %v462_v51  ;;  %v1317_v16 = vmax.f32 %v1158_v5, 0.0  ;;  %v1346_v37 = vstv %s2322_s8 }
 0x14b   :  { %v1184_v58 = vadd.f32 %v1183_v9, %v1171_v55  ;;  %v1336_v26 = vmul.f32 %v1332_v17, %v1317_v16 }
 0x14c   :  { %v1146_v40 = vpop.f32.mrf.mxu2  ;;  %v1159_v10 = vpop.f32.mrf.mxu3 }
 0x150   :  { %v1172_v41 = vpop.f32.mrf.mxu0  ;;  %v1185_v42 = vpop.f32.mrf.mxu1 }
 0x154   :  { %v1196_v43 = vpop.f32.mrf.mxu2  ;;  %v1209_v38 = vpop.f32.mrf.mxu3 }
 0x155   :  { %v1197_v61 = vadd.f32 %v1196_v43, %v1184_v58 }
 0x157   :  { %v1210_v3 = vadd.f32 %v1209_v38, %v1197_v61 }
 0x158   :  { %v1222_v44 = vpop.f32.mrf.mxu0  ;;  %v1235_v39 = vpop.f32.mrf.mxu1 }
 0x159   :  { %v1223_v56 = vadd.f32 %v1222_v44, %v463_v54  ;;  %v1318_v14 = vmax.f32 %v1210_v3, 0.0 }
 0x15b   :  { %v1236_v62 = vadd.f32 %v1235_v39, %v1223_v56  ;;  %v1337_v24 = vmul.f32 %v1333_v15, %v1318_v14 }
 0x15c   :  { %v1198_v45 = vpop.f32.mrf.mxu2  ;;  %v1211_v46 = vpop.f32.mrf.mxu3 }
 0x15d   :  { %v1340_v31 = vadd.f32 %v1337_v24, %v1336_v26 }
 0x160   :  { %v1224_v47 = vpop.f32.mrf.mxu0  ;;  %v1237_v48 = vpop.f32.mrf.mxu1 }
 0x164   :  { %v1248_v49 = vpop.f32.mrf.mxu2  ;;  %v1261_v50 = vpop.f32.mrf.mxu3 }
 0x165   :  { %v1249_v1 = vadd.f32 %v1248_v49, %v1236_v62 }
 0x167   :  { %v1262_v7 = vadd.f32 %v1261_v50, %v1249_v1 }
 0x169   :  { %v1319_v18 = vmax.f32 %v1262_v7, 0.0 }
 0x16b   :  { %v1338_v27 = vmul.f32 %v1334_v19, %v1319_v18 }
 0x16c   :  { %v1250_v52 = vpop.f32.mrf.mxu2  ;;  %v1263_v53 = vpop.f32.mrf.mxu3 }
 0x16d   :  { %v1341_v33 = vadd.f32 %v1340_v31, %v1338_v27 }
 0x178   :  { %v1274_v59 = vpop.f32.mrf.mxu0  ;;  %v1287_v60 = vpop.f32.mrf.mxu1 }
 0x179   :  { %v1275_v11 = vadd.f32 %v1274_v59, %v464_v2 }
 0x17b   :  { %v1288_v20 = vadd.f32 %v1287_v60, %v1275_v11 }
 0x180   :  { %v1276_v12 = vpop.f32.mrf.mxu0  ;;  %v1289_v13 = vpop.f32.mrf.mxu1 }
 0x184   :  { %v1300_v22 = vpop.f32.mrf.mxu2  ;;  %v1313_v23 = vpop.f32.mrf.mxu3 }
 0x185   :  { %v1301_v25 = vadd.f32 %v1300_v22, %v1288_v20 }
 0x187   :  { %v1314_v28 = vadd.f32 %v1313_v23, %v1301_v25 }
 0x189   :  { %v1320_v30 = vmax.f32 %v1314_v28, 0.0 }
 0x18b   :  { %v1339_v32 = vmul.f32 %v1335_v29, %v1320_v30 }
 0x18c   :  { %v1302_v34 = vpop.f32.mrf.mxu2  ;;  %v1315_v35 = vpop.f32.mrf.mxu3 }
 0x18d   :  { %v1342_v36 = vadd.f32 %v1341_v33, %v1339_v32 }
 0x18f   :  { %1343 = vadd.xlane.f32.xlu0 %v1342_v36 }
 0x202   :  { %v1344_v9 = vpop.xlane.xlu0 %1343 }
 0x203   :  { %v1347_v40 = vadd.f32 %v1346_v37, %v1344_v9 }
 0x205   :  { %1349 = vst.msk [vmem:[%s2323_s9] sm:$0xff] %vm1348_vm3, %v1347_v40 }
 0x206   :  { %1354 = vsyncpa [#allocation4], 1 }
 0x207   :  { %1355 = vsyncpa [#allocation6], 1 }
 0x208   :  { %1356 = vsyncpa [#allocation9], 1 }
 0x209   :  { %1357 = vsyncpa [#allocation12], 1 }

</bundles_post_ra>
